<compile_context>
chip_gen: v5e
topology: v5e:2x2
jax: 0.10.0
libtpu: 0.0.40
codegen_flags: <defaults>
</compile_context>

<pallas_src>
import functools

import jax
import jax.numpy as jnp
from jax import lax
from jax.experimental import pallas as pl
from jax.experimental.pallas import tpu as pltpu


# --------------------------------------------------------------------------
# Tiling policy
# --------------------------------------------------------------------------
def _choose_tiling(B, L, Cin, Cout, slab_bytes, lane_tile_cap=None):
    """Pick a lane tiling for the flattened (C, B*L) layout.

    Every lane tile is a multiple of 128 (lane-dense stores) and a whole
    number of (possibly padded) sequences, so the in-kernel roll+mask shifts
    never mix neighbouring sequences.
    """
    budget = 8 * 1024 * 1024                       # conservative across v5e/v6e/v7x
    per_lane = (2 * (Cin + Cout) * slab_bytes      # double-buffered in/out blocks
                + (3 * Cin + 5 * Cout + 4) * 4)    # in-kernel f32 temporaries
    max_lanes = (budget // per_lane) // 128 * 128
    max_lanes = max(128, min(32768, max_lanes))
    if lane_tile_cap is not None:
        max_lanes = max(128, min(max_lanes, (lane_tile_cap // 128) * 128))

    BL = B * L
    # 1) whole-sequence batch tiles whose lane extent is a 128-multiple.
    for b in range(B, 0, -1):
        if B % b == 0 and (b * L) % 128 == 0 and b * L <= max_lanes:
            return dict(Bp=B, Lp=L, period=L, lane_tile=b * L,
                        total=BL, n_steps=B // b)
    # 2) tiny problem: a single zero-padded, lane-dense step.
    total = -(-BL // 128) * 128
    if total <= max_lanes:
        return dict(Bp=B, Lp=L, period=L, lane_tile=total,
                    total=total, n_steps=1)
    # 3) large awkward shapes: pad each sequence to a 128-multiple and tile
    #    over whole padded sequences (VMEM-bounded, unlike the old fallback).
    Lp = -(-L // 128) * 128
    bt = max(1, min(B, max_lanes // Lp))
    # TODO(synk): if a single padded sequence alone exceeds the VMEM budget
    # (tiny B, enormous L) this still emits one oversized step; a 1-column
    # halo intra-sequence tiling would bound that case too.
    Bp = -(-B // bt) * bt
    return dict(Bp=Bp, Lp=Lp, period=Lp, lane_tile=bt * Lp,
                total=Bp * Lp, n_steps=Bp // bt)


# --------------------------------------------------------------------------
# Kernel
# --------------------------------------------------------------------------
def _resblock_kernel(x_ref, p_ref, out_ref, *, cin, cout, period, valid_len):
    """x_ref  : (Cin,  N)              centre input rows (N = lane tile, %128==0)
       p_ref  : (Cout, 4*Cin+3*Cout+2) packed parameters (f32)
       out_ref: (Cout, N)
    """
    f32 = jnp.float32
    n = x_ref.shape[1]
    x = x_ref[...].astype(f32)
    p = p_ref[...]

    # Packed parameter column offsets (static).
    o_w1 = 0                        # (Cout, 3*Cin)  conv1 weights, tap-major
    o_b1 = o_w1 + 3 * cin           # (Cout, 1)      conv1 bias
    o_wd = o_b1 + 1                 # (Cout, Cin)    downsample (k=1) weights
    o_w2 = o_wd + cin               # (Cout, 3*Cout) conv2 weights, tap-major
    o_bo = o_w2 + 3 * cout          # (Cout, 1)      merged bias (b2 + bd)

    # Sequence-edge masks from the global lane position (no HBM traffic).
    g = pl.program_id(0) * n + lax.broadcasted_iota(jnp.int32, (1, n), 1)
    pos = g % period                                   # position within a sequence
    left_ok = (pos != 0).astype(f32)                   # x/h[t-1] is valid
    right_ok = (pos != (valid_len - 1)).astype(f32)    # x/h[t+1] is valid

    def contract(w_cols, rows, acc):
        # acc[c, t] += sum_j w_cols[c, j] * rows[j, t]
        k = rows.shape[0]
        if k > 16:                                     # deep contraction -> MXU
            return acc + jnp.dot(w_cols, rows, preferred_element_type=f32)
        for j in range(k):                             # tiny contraction -> VPU FMAs
            acc = acc + w_cols[:, j:j + 1] * rows[j:j + 1, :]
        return acc

    # ---- conv1 (k=3, pad=1): +-1 taps via XLU roll + edge masks --------------
    x_prev = pltpu.roll(x, shift=1, axis=1) * left_ok         # x[:, t-1]
    x_next = pltpu.roll(x, shift=n - 1, axis=1) * right_ok    # x[:, t+1]

    y1 = jnp.broadcast_to(p[:, o_b1:o_b1 + 1], (cout, n))
    y1 = contract(p[:, o_w1:o_w1 + cin], x_prev, y1)
    y1 = contract(p[:, o_w1 + cin:o_w1 + 2 * cin], x, y1)
    y1 = contract(p[:, o_w1 + 2 * cin:o_w1 + 3 * cin], x_next, y1)

    # ---- ReLU -----------------------------------------------------------------
    h = jnp.maximum(y1, 0.0)

    # ---- conv2 (k=3, pad=1) ----------------------------------------------------
    h_prev = pltpu.roll(h, shift=1, axis=1) * left_ok
    h_next = pltpu.roll(h, shift=n - 1, axis=1) * right_ok

    y2 = jnp.broadcast_to(p[:, o_bo:o_bo + 1], (cout, n))     # b2 + bd
    y2 = contract(p[:, o_w2:o_w2 + cout], h_prev, y2)
    y2 = contract(p[:, o_w2 + cout:o_w2 + 2 * cout], h, y2)
    y2 = contract(p[:, o_w2 + 2 * cout:o_w2 + 3 * cout], h_next, y2)

    # ---- downsample (k=1) on the unshifted input -------------------------------
    y2 = contract(p[:, o_wd:o_wd + cin], x, y2)

    out_ref[...] = y2.astype(out_ref.dtype)


# --------------------------------------------------------------------------
# Wrapper
# --------------------------------------------------------------------------
def resblock_pallas(x, w1, b1, w2, b2, wd=None, bd=None, *, lane_tile_cap=None):
    """x: (B, Cin, L).  Weights in PyTorch Conv1d layout: w1 (Cout, Cin, 3),
    w2 (Cout, Cout, 3), wd (Cout, Cin, 1); biases shaped (Cout,).
    wd/bd may be None (identity downsample, requires Cin == Cout)."""
    orig_dtype = x.dtype
    B, Cin, L = x.shape
    Cout = w1.shape[0]
    f32 = jnp.float32

    if wd is None:
        wd = jnp.eye(Cout, dtype=f32)[:, :, None]      # identity downsample
    if bd is None:
        bd = jnp.zeros((Cout,), f32)

    slab_dtype = jnp.bfloat16 if x.dtype == jnp.bfloat16 else f32
    slab_bytes = 2 if slab_dtype == jnp.bfloat16 else 4

    t = _choose_tiling(B, L, Cin, Cout, slab_bytes, lane_tile_cap)
    Bp, Lp, period = t["Bp"], t["Lp"], t["period"]
    lane_tile, total, n_steps = t["lane_tile"], t["total"], t["n_steps"]

    # Activation slab: only the Cin centre rows, flattened to (Cin, Bp*Lp).
    xs = x.astype(slab_dtype)
    if Bp != B or Lp != L:
        xs = jnp.pad(xs, ((0, Bp - B), (0, 0), (0, Lp - L)))
    aux = jnp.transpose(xs, (1, 0, 2)).reshape(Cin, Bp * Lp)
    if total > Bp * Lp:
        aux = jnp.pad(aux, ((0, 0), (0, total - Bp * Lp)))

    # Single packed parameter slab -> one tiny DMA, resident across all steps.
    w1f = jnp.transpose(w1.astype(f32), (0, 2, 1)).reshape(Cout, 3 * Cin)
    w2f = jnp.transpose(w2.astype(f32), (0, 2, 1)).reshape(Cout, 3 * Cout)
    wdf = wd.astype(f32)[:, :, 0]
    b1c = b1.astype(f32)[:, None]
    boc = (b2.astype(f32) + bd.astype(f32))[:, None]           # merged bias
    params = jnp.concatenate([w1f, b1c, wdf, w2f, boc], axis=1)
    P = params.shape[1]

    kernel = functools.partial(_resblock_kernel, cin=Cin, cout=Cout,
                               period=period, valid_len=L)

    out2d = pl.pallas_call(
        kernel,
        out_shape=jax.ShapeDtypeStruct((Cout, total), slab_dtype),
        grid=(n_steps,),
        in_specs=[
            pl.BlockSpec((Cin, lane_tile), lambda i: (0, i)),
            pl.BlockSpec((Cout, P), lambda i: (0, 0)),
        ],
        out_specs=pl.BlockSpec((Cout, lane_tile), lambda i: (0, i)),
        compiler_params=pltpu.CompilerParams(
            dimension_semantics=("parallel",),
            vmem_limit_bytes=32 * 1024 * 1024),
    )(aux, params)

    # Un-flatten / un-pad.  (Layout plumbing kept in XLA; output already in
    # the caller's dtype so no extra cast pass.)
    out = out2d[:, :Bp * Lp].reshape(Cout, Bp, Lp)
    out = jnp.transpose(out, (1, 0, 2))[:B, :, :L]
    return out.astype(orig_dtype)


# --------------------------------------------------------------------------
# Pure-JAX reference mirroring the PyTorch module
# --------------------------------------------------------------------------
def resblock_reference(x, w1, b1, w2, b2, wd, bd):
    dn = ("NCH", "OIH", "NCH")
    prec = lax.Precision.HIGHEST
    y = lax.conv_general_dilated(x, w1, (1,), [(1, 1)], dimension_numbers=dn,
                                 precision=prec) + b1[None, :, None]
    y = jnp.maximum(y, 0.0)
    y = lax.conv_general_dilated(y, w2, (1,), [(1, 1)], dimension_numbers=dn,
                                 precision=prec) + b2[None, :, None]
    ds = lax.conv_general_dilated(x, wd, (1,), [(0, 0)], dimension_numbers=dn,
                                  precision=prec) + bd[None, :, None]
    return y + ds


if __name__ == "__main__":
    def make_params(key, Cin, Cout):
        k1, kb1, k2, kb2, kd, kbd = jax.random.split(key, 6)
        w1 = 0.1 * jax.random.normal(k1, (Cout, Cin, 3), jnp.float32)
        b1 = 0.1 * jax.random.normal(kb1, (Cout,), jnp.float32)
        w2 = 0.1 * jax.random.normal(k2, (Cout, Cout, 3), jnp.float32)
        b2 = 0.1 * jax.random.normal(kb2, (Cout,), jnp.float32)
        wd = 0.1 * jax.random.normal(kd, (Cout, Cin, 1), jnp.float32)
        bd = 0.1 * jax.random.normal(kbd, (Cout,), jnp.float32)
        return w1, b1, w2, b2, wd, bd

    def check(key, B, Cin, Cout, L, lane_cap=None):
        kx, kp = jax.random.split(key)
        x = jax.random.normal(kx, (B, Cin, L), jnp.float32)
        prm = make_params(kp, Cin, Cout)
        out = jax.block_until_ready(
            resblock_pallas(x, *prm, lane_tile_cap=lane_cap))
        ref = resblock_reference(x, *prm)
        assert out.shape == (B, Cout, L), out.shape
        assert jnp.allclose(out, ref, atol=2e-5, rtol=2e-5), \
            float(jnp.max(jnp.abs(out - ref)))

    root = jax.random.PRNGKey(0)
    k0, k1, k2 = jax.random.split(root, 3)
    # Module defaults (Cin=1, Cout=4): tiny problem -> single padded step.
    check(k0, B=2, Cin=1, Cout=4, L=16)
    # Multi-step whole-sequence batch tiling (forced small lane cap).
    check(k1, B=8, Cin=2, Cout=8, L=64, lane_cap=128)
    # Per-sequence-padded path (awkward B/L, forced small lane cap).
    check(k2, B=3, Cin=1, Cout=4, L=100, lane_cap=256)

    print("KERNEL_OK")
</pallas_src>

<mosaic_0001>
module attributes {stable_mosaic.version = 11 : i64} {
  func.func @_resblock_kernel(%arg0: i32, %arg1: memref<1x128xf32, #tpu.memory_space<vmem>>, %arg2: memref<4x18xf32, #tpu.memory_space<vmem>>, %arg3: memref<4x128xf32, #tpu.memory_space<vmem>>) attributes {dimension_semantics = [#tpu.dimension_semantics<parallel>], iteration_bounds = array<i64: 1>, scalar_prefetch = 0 : i64, scratch_operands = 0 : i64, tpu.core_type = #tpu.core_type<tc>, window_params = [{transform_indices = @transform_0, window_bounds = array<i64: 1, 128>}, {pipeline_mode = #tpu.pipeline_mode<synchronous>, transform_indices = @transform_1, window_bounds = array<i64: 4, 18>}, {transform_indices = @transform_2, window_bounds = array<i64: 4, 128>}]} {
    %c0 = arith.constant 0 : index
    %c0_0 = arith.constant 0 : index
    %0 = vector.load %arg1[%c0, %c0_0] : memref<1x128xf32, #tpu.memory_space<vmem>>, vector<1x128xf32>
    %c0_1 = arith.constant 0 : index
    %c0_2 = arith.constant 0 : index
    %1 = vector.load %arg2[%c0_1, %c0_2] : memref<4x18xf32, #tpu.memory_space<vmem>>, vector<4x18xf32>
    %c128_i32 = arith.constant 128 : i32
    %2 = arith.muli %arg0, %c128_i32 : i32
    %3 = tpu.iota {dimensions = array<i32: 1>} : vector<1x128xi32>
    %4 = vector.broadcast %2 : i32 to vector<1x128xi32>
    %5 = arith.addi %4, %3 : vector<1x128xi32>
    %c16_i32 = arith.constant 16 : i32
    %c0_i32 = arith.constant 0 : i32
    %6 = arith.cmpi eq, %c16_i32, %c0_i32 : i32
    %c1_i32 = arith.constant 1 : i32
    %7 = arith.select %6, %c1_i32, %c16_i32 : i32
    %8 = vector.broadcast %7 : i32 to vector<1x128xi32>
    %9 = arith.remsi %5, %8 : vector<1x128xi32>
    %c0_i32_3 = arith.constant 0 : i32
    %10 = vector.broadcast %c0_i32_3 : i32 to vector<1x128xi32>
    %11 = arith.cmpi ne, %9, %10 : vector<1x128xi32>
    %c0_i32_4 = arith.constant 0 : i32
    %12 = vector.broadcast %c0_i32_4 : i32 to vector<1x128xi32>
    %13 = arith.cmpi slt, %9, %12 : vector<1x128xi32>
    %c0_i32_5 = arith.constant 0 : i32
    %14 = arith.cmpi slt, %7, %c0_i32_5 : i32
    %15 = vector.broadcast %14 : i1 to vector<1x128xi1>
    %16 = vector.broadcast %15 : vector<1x128xi1> to vector<1x128xi1>
    %17 = arith.xori %13, %16 : vector<1x128xi1>
    %18 = arith.andi %17, %11 : vector<1x128xi1>
    %19 = vector.broadcast %7 : i32 to vector<1x128xi32>
    %20 = arith.addi %9, %19 : vector<1x128xi32>
    %21 = arith.select %18, %20, %9 : vector<1x128xi1>, vector<1x128xi32>
    %c0_i32_6 = arith.constant 0 : i32
    %22 = vector.broadcast %c0_i32_6 : i32 to vector<1x128xi32>
    %23 = arith.cmpi ne, %21, %22 : vector<1x128xi32>
    %24 = arith.extui %23 : vector<1x128xi1> to vector<1x128xi32>
    %25 = arith.sitofp %24 : vector<1x128xi32> to vector<1x128xf32>
    %c15_i32 = arith.constant 15 : i32
    %26 = vector.broadcast %c15_i32 : i32 to vector<1x128xi32>
    %27 = arith.cmpi ne, %21, %26 : vector<1x128xi32>
    %28 = arith.extui %27 : vector<1x128xi1> to vector<1x128xi32>
    %29 = arith.sitofp %28 : vector<1x128xi32> to vector<1x128xf32>
    %c1_i32_7 = arith.constant 1 : i32
    %30 = tpu.dynamic_rotate %0 by %c1_i32_7 dim 1 : vector<1x128xf32>, i32 -> vector<1x128xf32>
    %31 = arith.mulf %30, %25 : vector<1x128xf32>
    %c127_i32 = arith.constant 127 : i32
    %32 = tpu.dynamic_rotate %0 by %c127_i32 dim 1 : vector<1x128xf32>, i32 -> vector<1x128xf32>
    %33 = arith.mulf %32, %29 : vector<1x128xf32>
    %34 = vector.extract_strided_slice %1 {offsets = [0, 3], sizes = [4, 1], strides = [1, 1]} : vector<4x18xf32> to vector<4x1xf32>
    %35 = vector.shape_cast %34 : vector<4x1xf32> to vector<4x1xf32>
    %36 = vector.broadcast %35 : vector<4x1xf32> to vector<4x128xf32>
    %37 = vector.extract_strided_slice %1 {offsets = [0, 0], sizes = [4, 1], strides = [1, 1]} : vector<4x18xf32> to vector<4x1xf32>
    %38 = vector.broadcast %37 : vector<4x1xf32> to vector<4x128xf32>
    %39 = vector.broadcast %31 : vector<1x128xf32> to vector<4x128xf32>
    %40 = arith.mulf %38, %39 : vector<4x128xf32>
    %41 = arith.addf %36, %40 : vector<4x128xf32>
    %42 = vector.extract_strided_slice %1 {offsets = [0, 1], sizes = [4, 1], strides = [1, 1]} : vector<4x18xf32> to vector<4x1xf32>
    %43 = vector.broadcast %42 : vector<4x1xf32> to vector<4x128xf32>
    %44 = vector.broadcast %0 : vector<1x128xf32> to vector<4x128xf32>
    %45 = arith.mulf %43, %44 : vector<4x128xf32>
    %46 = arith.addf %41, %45 : vector<4x128xf32>
    %47 = vector.extract_strided_slice %1 {offsets = [0, 2], sizes = [4, 1], strides = [1, 1]} : vector<4x18xf32> to vector<4x1xf32>
    %48 = vector.broadcast %47 : vector<4x1xf32> to vector<4x128xf32>
    %49 = vector.broadcast %33 : vector<1x128xf32> to vector<4x128xf32>
    %50 = arith.mulf %48, %49 : vector<4x128xf32>
    %51 = arith.addf %46, %50 : vector<4x128xf32>
    %cst = arith.constant 0.000000e+00 : f32
    %52 = vector.broadcast %cst : f32 to vector<4x128xf32>
    %53 = arith.maximumf %51, %52 : vector<4x128xf32>
    %c1_i32_8 = arith.constant 1 : i32
    %54 = tpu.dynamic_rotate %53 by %c1_i32_8 dim 1 : vector<4x128xf32>, i32 -> vector<4x128xf32>
    %55 = vector.broadcast %25 : vector<1x128xf32> to vector<4x128xf32>
    %56 = arith.mulf %54, %55 : vector<4x128xf32>
    %c127_i32_9 = arith.constant 127 : i32
    %57 = tpu.dynamic_rotate %53 by %c127_i32_9 dim 1 : vector<4x128xf32>, i32 -> vector<4x128xf32>
    %58 = vector.broadcast %29 : vector<1x128xf32> to vector<4x128xf32>
    %59 = arith.mulf %57, %58 : vector<4x128xf32>
    %60 = vector.extract_strided_slice %1 {offsets = [0, 17], sizes = [4, 1], strides = [1, 1]} : vector<4x18xf32> to vector<4x1xf32>
    %61 = vector.shape_cast %60 : vector<4x1xf32> to vector<4x1xf32>
    %62 = vector.broadcast %61 : vector<4x1xf32> to vector<4x128xf32>
    %63 = vector.extract_strided_slice %1 {offsets = [0, 5], sizes = [4, 4], strides = [1, 1]} : vector<4x18xf32> to vector<4x4xf32>
    %64 = vector.extract_strided_slice %63 {offsets = [0, 0], sizes = [4, 1], strides = [1, 1]} : vector<4x4xf32> to vector<4x1xf32>
    %65 = vector.extract_strided_slice %56 {offsets = [0, 0], sizes = [1, 128], strides = [1, 1]} : vector<4x128xf32> to vector<1x128xf32>
    %66 = vector.broadcast %64 : vector<4x1xf32> to vector<4x128xf32>
    %67 = vector.broadcast %65 : vector<1x128xf32> to vector<4x128xf32>
    %68 = arith.mulf %66, %67 : vector<4x128xf32>
    %69 = arith.addf %62, %68 : vector<4x128xf32>
    %70 = vector.extract_strided_slice %63 {offsets = [0, 1], sizes = [4, 1], strides = [1, 1]} : vector<4x4xf32> to vector<4x1xf32>
    %71 = vector.extract_strided_slice %56 {offsets = [1, 0], sizes = [1, 128], strides = [1, 1]} : vector<4x128xf32> to vector<1x128xf32>
    %72 = vector.broadcast %70 : vector<4x1xf32> to vector<4x128xf32>
    %73 = vector.broadcast %71 : vector<1x128xf32> to vector<4x128xf32>
    %74 = arith.mulf %72, %73 : vector<4x128xf32>
    %75 = arith.addf %69, %74 : vector<4x128xf32>
    %76 = vector.extract_strided_slice %63 {offsets = [0, 2], sizes = [4, 1], strides = [1, 1]} : vector<4x4xf32> to vector<4x1xf32>
    %77 = vector.extract_strided_slice %56 {offsets = [2, 0], sizes = [1, 128], strides = [1, 1]} : vector<4x128xf32> to vector<1x128xf32>
    %78 = vector.broadcast %76 : vector<4x1xf32> to vector<4x128xf32>
    %79 = vector.broadcast %77 : vector<1x128xf32> to vector<4x128xf32>
    %80 = arith.mulf %78, %79 : vector<4x128xf32>
    %81 = arith.addf %75, %80 : vector<4x128xf32>
    %82 = vector.extract_strided_slice %63 {offsets = [0, 3], sizes = [4, 1], strides = [1, 1]} : vector<4x4xf32> to vector<4x1xf32>
    %83 = vector.extract_strided_slice %56 {offsets = [3, 0], sizes = [1, 128], strides = [1, 1]} : vector<4x128xf32> to vector<1x128xf32>
    %84 = vector.broadcast %82 : vector<4x1xf32> to vector<4x128xf32>
    %85 = vector.broadcast %83 : vector<1x128xf32> to vector<4x128xf32>
    %86 = arith.mulf %84, %85 : vector<4x128xf32>
    %87 = arith.addf %81, %86 : vector<4x128xf32>
    %88 = vector.extract_strided_slice %1 {offsets = [0, 9], sizes = [4, 4], strides = [1, 1]} : vector<4x18xf32> to vector<4x4xf32>
    %89 = vector.extract_strided_slice %88 {offsets = [0, 0], sizes = [4, 1], strides = [1, 1]} : vector<4x4xf32> to vector<4x1xf32>
    %90 = vector.extract_strided_slice %53 {offsets = [0, 0], sizes = [1, 128], strides = [1, 1]} : vector<4x128xf32> to vector<1x128xf32>
    %91 = vector.broadcast %89 : vector<4x1xf32> to vector<4x128xf32>
    %92 = vector.broadcast %90 : vector<1x128xf32> to vector<4x128xf32>
    %93 = arith.mulf %91, %92 : vector<4x128xf32>
    %94 = arith.addf %87, %93 : vector<4x128xf32>
    %95 = vector.extract_strided_slice %88 {offsets = [0, 1], sizes = [4, 1], strides = [1, 1]} : vector<4x4xf32> to vector<4x1xf32>
    %96 = vector.extract_strided_slice %53 {offsets = [1, 0], sizes = [1, 128], strides = [1, 1]} : vector<4x128xf32> to vector<1x128xf32>
    %97 = vector.broadcast %95 : vector<4x1xf32> to vector<4x128xf32>
    %98 = vector.broadcast %96 : vector<1x128xf32> to vector<4x128xf32>
    %99 = arith.mulf %97, %98 : vector<4x128xf32>
    %100 = arith.addf %94, %99 : vector<4x128xf32>
    %101 = vector.extract_strided_slice %88 {offsets = [0, 2], sizes = [4, 1], strides = [1, 1]} : vector<4x4xf32> to vector<4x1xf32>
    %102 = vector.extract_strided_slice %53 {offsets = [2, 0], sizes = [1, 128], strides = [1, 1]} : vector<4x128xf32> to vector<1x128xf32>
    %103 = vector.broadcast %101 : vector<4x1xf32> to vector<4x128xf32>
    %104 = vector.broadcast %102 : vector<1x128xf32> to vector<4x128xf32>
    %105 = arith.mulf %103, %104 : vector<4x128xf32>
    %106 = arith.addf %100, %105 : vector<4x128xf32>
    %107 = vector.extract_strided_slice %88 {offsets = [0, 3], sizes = [4, 1], strides = [1, 1]} : vector<4x4xf32> to vector<4x1xf32>
    %108 = vector.extract_strided_slice %53 {offsets = [3, 0], sizes = [1, 128], strides = [1, 1]} : vector<4x128xf32> to vector<1x128xf32>
    %109 = vector.broadcast %107 : vector<4x1xf32> to vector<4x128xf32>
    %110 = vector.broadcast %108 : vector<1x128xf32> to vector<4x128xf32>
    %111 = arith.mulf %109, %110 : vector<4x128xf32>
    %112 = arith.addf %106, %111 : vector<4x128xf32>
    %113 = vector.extract_strided_slice %1 {offsets = [0, 13], sizes = [4, 4], strides = [1, 1]} : vector<4x18xf32> to vector<4x4xf32>
    %114 = vector.extract_strided_slice %113 {offsets = [0, 0], sizes = [4, 1], strides = [1, 1]} : vector<4x4xf32> to vector<4x1xf32>
    %115 = vector.extract_strided_slice %59 {offsets = [0, 0], sizes = [1, 128], strides = [1, 1]} : vector<4x128xf32> to vector<1x128xf32>
    %116 = vector.broadcast %114 : vector<4x1xf32> to vector<4x128xf32>
    %117 = vector.broadcast %115 : vector<1x128xf32> to vector<4x128xf32>
    %118 = arith.mulf %116, %117 : vector<4x128xf32>
    %119 = arith.addf %112, %118 : vector<4x128xf32>
    %120 = vector.extract_strided_slice %113 {offsets = [0, 1], sizes = [4, 1], strides = [1, 1]} : vector<4x4xf32> to vector<4x1xf32>
    %121 = vector.extract_strided_slice %59 {offsets = [1, 0], sizes = [1, 128], strides = [1, 1]} : vector<4x128xf32> to vector<1x128xf32>
    %122 = vector.broadcast %120 : vector<4x1xf32> to vector<4x128xf32>
    %123 = vector.broadcast %121 : vector<1x128xf32> to vector<4x128xf32>
    %124 = arith.mulf %122, %123 : vector<4x128xf32>
    %125 = arith.addf %119, %124 : vector<4x128xf32>
    %126 = vector.extract_strided_slice %113 {offsets = [0, 2], sizes = [4, 1], strides = [1, 1]} : vector<4x4xf32> to vector<4x1xf32>
    %127 = vector.extract_strided_slice %59 {offsets = [2, 0], sizes = [1, 128], strides = [1, 1]} : vector<4x128xf32> to vector<1x128xf32>
    %128 = vector.broadcast %126 : vector<4x1xf32> to vector<4x128xf32>
    %129 = vector.broadcast %127 : vector<1x128xf32> to vector<4x128xf32>
    %130 = arith.mulf %128, %129 : vector<4x128xf32>
    %131 = arith.addf %125, %130 : vector<4x128xf32>
    %132 = vector.extract_strided_slice %113 {offsets = [0, 3], sizes = [4, 1], strides = [1, 1]} : vector<4x4xf32> to vector<4x1xf32>
    %133 = vector.extract_strided_slice %59 {offsets = [3, 0], sizes = [1, 128], strides = [1, 1]} : vector<4x128xf32> to vector<1x128xf32>
    %134 = vector.broadcast %132 : vector<4x1xf32> to vector<4x128xf32>
    %135 = vector.broadcast %133 : vector<1x128xf32> to vector<4x128xf32>
    %136 = arith.mulf %134, %135 : vector<4x128xf32>
    %137 = arith.addf %131, %136 : vector<4x128xf32>
    %138 = vector.extract_strided_slice %1 {offsets = [0, 4], sizes = [4, 1], strides = [1, 1]} : vector<4x18xf32> to vector<4x1xf32>
    %139 = vector.broadcast %138 : vector<4x1xf32> to vector<4x128xf32>
    %140 = vector.broadcast %0 : vector<1x128xf32> to vector<4x128xf32>
    %141 = arith.mulf %139, %140 : vector<4x128xf32>
    %142 = arith.addf %137, %141 : vector<4x128xf32>
    %c0_10 = arith.constant 0 : index
    %c0_11 = arith.constant 0 : index
    %143 = vector.load %arg3[%c0_10, %c0_11] : memref<4x128xf32, #tpu.memory_space<vmem>>, vector<4x128xf32>
    tpu.vector_store %arg3[%c0_10, %c0_11], %142 {strides = array<i32>} : memref<4x128xf32, #tpu.memory_space<vmem>>, vector<4x128xf32>,
    return
  }
  func.func @transform_0(%arg0: i32) -> (i32, i32) {
    %c0_i32 = arith.constant 0 : i32
    %c0_i32_0 = arith.constant 0 : i32
    return %c0_i32, %arg0 : i32, i32
  }
  func.func @transform_1(%arg0: i32) -> (i32, i32) {
    %c0_i32 = arith.constant 0 : i32
    %c0_i32_0 = arith.constant 0 : i32
    %c0_i32_1 = arith.constant 0 : i32
    return %c0_i32, %c0_i32_0 : i32, i32
  }
  func.func @transform_2(%arg0: i32) -> (i32, i32) {
    %c0_i32 = arith.constant 0 : i32
    %c0_i32_0 = arith.constant 0 : i32
    return %c0_i32, %arg0 : i32, i32
  }
}

</mosaic_0001>

<bundles_post_ra>
// kernel: tpu_custom_call.1
= control target key start
LH: loop header
LB: loop body
LE: loop exit
PB: predicated region body
PF: predicated region fallthrough
CT: control target
= control target key end

     0   :  { %7 = vsyncpa [#allocation3], 0  ;;  %s419_s0 = inlined_call_operand.hbm [shape: f32[1,128], index: 0, kind: input, shape index: {}]   ;;  %s420_s1 = inlined_call_operand.hbm [shape: f32[4,18], index: 1, kind: input, shape index: {}]   ;;  %s421_s2 = inlined_call_operand.hbm [shape: f32[4,128], index: 2, kind: output, shape index: {}]  }
   0x1   :  { %8 = vsyncpa [#allocation6], 0 }
   0x2   :  { %9 = vsyncpa [#allocation4], 0  ;;  %s15_s11 = sshll.u32 %s419_s0, 4  ;;  %s343_s12 = smov [#allocation2]   ;;  %s16_s11 = int_to_ptr.hbm [resolvable:$true] %s15_s11 }
   0x3   :  { %s17_s13 = sshll.u32 %s343_s12, 4  ;;  %s26_s16 = sshll.u32 %s420_s1, 4  ;;  %s18_s13 = int_to_ptr.vmem [resolvable:$true] %s17_s13  ;;  %s27_s16 = int_to_ptr.hbm [resolvable:$true] %s26_s16 }
   0x4   :  { %20 = dma.hbm_to_vmem [thread:$0]  %s16_s11, 16, %s18_s13, [#allocation3]  }
   0x5   :  { %s344_s17 = smov [#allocation5]  }
   0x6   :  { %s28_s18 = sshll.u32 %s344_s17, 4  ;;  %s29_s18 = int_to_ptr.vmem [resolvable:$true] %s28_s18 }
   0x7   :  { %31 = dma.hbm_to_vmem [thread:$0]  %s27_s16, 64, %s29_s18, [#allocation6]  }
   0x8   :  { %337 = dma.done.wait [#allocation3], 16  }
   0x9   :  { %338 = vsyncadd [#allocation3], 4294967280 }
   0xa   :  { %339 = dma.done.wait [#allocation6], 64  }
   0xb   :  { %340 = vsyncadd [#allocation6], 4294967232  ;;  %v345_v0 = vmov 1   ;;  %v346_v1 = vmov 0   ;;  %v388_v2 = vld [vmem:[#allocation5] sm:$0xf]  ;;  %v43_v14 = vlaneseq }
   0xc   :  { %247 = vset.pattern.permute.xlu2 %v345_v0  ;;  %245 = vset.pattern.permute.xlu1 %v346_v1  ;;  %v40_v3 = vld [vmem:[#allocation2] sm:$0x1]  ;;  %s347_s0 = smov 1   ;;  %v348_v4 = vmov 2   ;;  %v349_v5 = vmov 3   ;;  %s350_s1 = smov 127  }
   0xd   :  { %84 = vperm.xlu2 %247, %v388_v2   ;;  %77 = vperm.xlu1 %245, %v388_v2   ;;  %v351_v6 = vmov 17   ;;  %v352_v7 = vmov 6   ;;  %v353_v8 = vmov 7   ;;  %v354_v9 = vmov 8   ;;  %v404_v26 = vld [vmem:[#allocation2] ss:$0 sm:$0xff] }
   0xe   :  { %65 = vrot.lane.b32.xlu0 %v40_v3, %s347_s0  ;;  %v355_v10 = vmov 9   ;;  %v356_v11 = vmov 11   ;;  %v357_v12 = vmov 12   ;;  %v358_v13 = vmov 5   ;;  %s366_s19 = smov [#allocation7]   ;;  %s208_s23 = sshll.u32 %s421_s2, 4  ;;  %s209_s23 = int_to_ptr.hbm [resolvable:$true] %s208_s23 }
   0xf   :  { %250 = vset.pattern.permute.xlu0 %v358_v13  ;;  %v44_v15 = vand.u32 127, %v43_v14  ;;  %v359_v16 = vmov 13   ;;  %v360_v17 = vmov 10   ;;  %v361_v19 = vmov 0.0   ;;  %s206_s20 = sshll.u32 %s366_s19, 4  ;;  %s207_s20 = int_to_ptr.vmem [resolvable:$true] %s206_s20 }
  0x10   :  { %v362_v28 = vmov 14   ;;  %v363_v40 = vmov 4   ;;  %v364_v42 = vmov 16   ;;  %v365_v43 = vmov 15  }
  0x11   :  { %v51_v18 = vand.u32 15, %v44_v15 }
  0x13   :  { %vm59_vm0 = vcmp.ne.s32.totalorder %v51_v18, 0  ;;  %vm62_vm1 = vcmp.ne.s32.totalorder %v51_v18, 15 }
  0x14   :  { %v219_v20 = vsel %vm59_vm0, 1.0, %v361_v19  ;;  %v220_v27 = vsel %vm62_vm1, 1.0, %v361_v19 }
  0x15   :  { %248 = vset.pattern.permute.xlu2 %v348_v4  ;;  %246 = vset.pattern.permute.xlu1 %v349_v5 }
  0x16   :  { %68 = vrot.lane.b32.xlu0 %v40_v3, %s350_s1  ;;  %93 = vperm.xlu2 %248, %v388_v2  }
  0x17   :  { %73 = vperm.xlu1 %246, %v388_v2  }
  0x1e   :  { %249 = vset.pattern.permute.xlu2 %v351_v6  ;;  %111 = vperm.xlu0 %250, %v388_v2  }
  0x1f   :  { %251 = vset.pattern.permute.xlu1 %v352_v7  ;;  %107 = vperm.xlu2 %249, %v388_v2  }
  0x20   :  { %118 = vperm.xlu1 %251, %v388_v2  }
  0x26   :  { %255 = vset.pattern.permute.xlu0 %v360_v17 }
  0x27   :  { %252 = vset.pattern.permute.xlu2 %v353_v8 }
  0x28   :  { %253 = vset.pattern.permute.xlu1 %v354_v9  ;;  %125 = vperm.xlu2 %252, %v388_v2  }
  0x29   :  { %132 = vperm.xlu1 %253, %v388_v2  }
  0x30   :  { %254 = vset.pattern.permute.xlu2 %v355_v10 }
  0x31   :  { %256 = vset.pattern.permute.xlu1 %v356_v11  ;;  %139 = vperm.xlu2 %254, %v388_v2  }
  0x32   :  { %153 = vperm.xlu1 %256, %v388_v2  }
  0x39   :  { %257 = vset.pattern.permute.xlu2 %v357_v12 }
  0x3a   :  { %160 = vperm.xlu2 %257, %v388_v2   ;;  %258 = vset.pattern.permute.xlu1 %v359_v16 }
  0x42   :  { %259 = vset.pattern.permute.xlu2 %v362_v28 }
  0x43   :  { %174 = vperm.xlu2 %259, %v388_v2  }
  0x4b   :  { %262 = vset.pattern.permute.xlu2 %v363_v40 }
  0x4c   :  { %195 = vperm.xlu2 %262, %v388_v2  }
  0x67   :  { %v85_v24 = vpop.permute.xlu2 %84 }
  0x68   :  { %v90_v33 = vmul.f32 %v404_v26, %v85_v24 }
  0x70   :  { %v94_v36 = vpop.permute.xlu2 %93 }
  0x79   :  { %v108_v45 = vpop.permute.xlu2 %107 }
  0x7f   :  { %v78_v21 = vpop.permute.xlu1 %77 }
  0x80   :  { %v66_v22 = vpop.permute.xlu0 %65 }
  0x81   :  { %v67_v23 = vmul.f32 %v219_v20, %v66_v22 }
  0x82   :  { %v126_v47 = vpop.permute.xlu2 %125 }
  0x83   :  { %v80_v25 = vperm.slane %v67_v23, 0 }
  0x85   :  { %v81_v29 = vmul.f32 %v80_v25, %v78_v21 }
  0x88   :  { %v69_v30 = vpop.permute.xlu0 %68 }
  0x89   :  { %v70_v31 = vmul.f32 %v220_v27, %v69_v30  ;;  %v74_v32 = vpop.permute.xlu1 %73 }
  0x8a   :  { %v82_v34 = vadd.f32 %v81_v29, %v74_v32 }
  0x8b   :  { %v96_v35 = vperm.slane %v70_v31, 0  ;;  %v140_v50 = vpop.permute.xlu2 %139 }
  0x8c   :  { %v91_v37 = vadd.f32 %v90_v33, %v82_v34 }
  0x8d   :  { %v97_v38 = vmul.f32 %v96_v35, %v94_v36 }
  0x8f   :  { %v98_v39 = vadd.f32 %v97_v38, %v91_v37 }
  0x90   :  { %v112_v48 = vpop.permute.xlu0 %111 }
  0x91   :  { %v99_v41 = vmax.f32 %v98_v39, 0.0 }
  0x92   :  { %v119_v44 = vpop.permute.xlu1 %118 }
  0x93   :  { %103 = vrot.lane.b32.xlu1 %v99_v41, %s350_s1  ;;  %100 = vrot.lane.b32.xlu0 %v99_v41, %s347_s0  ;;  %v142_v62 = vperm.slane %v99_v41, 0  ;;  %v149_v6 = vperm.slane %v99_v41, 1  ;;  %v163_v7 = vperm.slane %v99_v41, 3  ;;  %v156_v9 = vperm.slane %v99_v41, 2 }
  0x94   :  { %v161_v61 = vpop.permute.xlu2 %160 }
  0x95   :  { %v143_v4 = vmul.f32 %v142_v62, %v140_v50  ;;  %v164_v16 = vmul.f32 %v163_v7, %v161_v61 }
  0x9b   :  { %167 = vperm.xlu1 %258, %v388_v2   ;;  %146 = vperm.xlu0 %255, %v388_v2   ;;  %v133_v46 = vpop.permute.xlu1 %132 }
  0x9d   :  { %v175_v13 = vpop.permute.xlu2 %174 }
  0xa3   :  { %261 = vset.pattern.permute.xlu1 %v364_v42  ;;  %260 = vset.pattern.permute.xlu0 %v365_v43 }
  0xa4   :  { %188 = vperm.xlu1 %261, %v388_v2   ;;  %181 = vperm.xlu0 %260, %v388_v2   ;;  %v154_v49 = vpop.permute.xlu1 %153 }
  0xa5   :  { %v157_v14 = vmul.f32 %v156_v9, %v154_v49 }
  0xa6   :  { %v196_v29 = vpop.permute.xlu2 %195 }
  0xa7   :  { %v198_v34 = vmul.f32 %v404_v26, %v196_v29 }
  0xac   :  { %263 = vset.pattern.permute.xlu0 %v363_v40 }
 0x105   :  { %v101_v51 = vpop.permute.xlu0 %100  ;;  %v104_v55 = vpop.permute.xlu1 %103 }
 0x106   :  { %v102_v52 = vmul.f32 %v219_v20, %v101_v51  ;;  %v105_v10 = vmul.f32 %v220_v27, %v104_v55 }
 0x108   :  { %v114_v53 = vperm.slane %v102_v52, 0  ;;  %v121_v54 = vperm.slane %v102_v52, 1  ;;  %v128_v57 = vperm.slane %v102_v52, 2  ;;  %v135_v59 = vperm.slane %v102_v52, 3 }
 0x109   :  { %v177_v17 = vperm.slane %v105_v10, 1  ;;  %v170_v18 = vperm.slane %v105_v10, 0  ;;  %v184_v24 = vperm.slane %v105_v10, 2  ;;  %v191_v30 = vperm.slane %v105_v10, 3 }
 0x10a   :  { %v115_v56 = vmul.f32 %v114_v53, %v112_v48  ;;  %v122_v58 = vmul.f32 %v121_v54, %v119_v44  ;;  %v129_v0 = vmul.f32 %v128_v57, %v126_v47  ;;  %v136_v2 = vmul.f32 %v135_v59, %v133_v46 }
 0x10b   :  { %v178_v23 = vmul.f32 %v177_v17, %v175_v13 }
 0x10c   :  { %v116_v60 = vadd.f32 %v115_v56, %v108_v45 }
 0x10d   :  { %v147_v3 = vpop.permute.xlu0 %146  ;;  %v168_v8 = vpop.permute.xlu1 %167 }
 0x10e   :  { %v123_v63 = vadd.f32 %v122_v58, %v116_v60  ;;  %v150_v12 = vmul.f32 %v149_v6, %v147_v3  ;;  %v171_v20 = vmul.f32 %v170_v18, %v168_v8 }
 0x110   :  { %v130_v1 = vadd.f32 %v129_v0, %v123_v63 }
 0x112   :  { %v137_v5 = vadd.f32 %v136_v2, %v130_v1 }
 0x114   :  { %v144_v11 = vadd.f32 %v143_v4, %v137_v5 }
 0x116   :  { %v151_v15 = vadd.f32 %v150_v12, %v144_v11  ;;  %v182_v22 = vpop.permute.xlu0 %181  ;;  %v189_v28 = vpop.permute.xlu1 %188 }
 0x117   :  { %v185_v27 = vmul.f32 %v184_v24, %v182_v22  ;;  %v192_v32 = vmul.f32 %v191_v30, %v189_v28 }
 0x118   :  { %v158_v19 = vadd.f32 %v157_v14, %v151_v15 }
 0x11a   :  { %v165_v21 = vadd.f32 %v164_v16, %v158_v19 }
 0x11c   :  { %v172_v25 = vadd.f32 %v171_v20, %v165_v21 }
 0x11e   :  { %v179_v31 = vadd.f32 %v178_v23, %v172_v25 }
 0x120   :  { %v186_v33 = vadd.f32 %v185_v27, %v179_v31 }
 0x122   :  { %v193_v35 = vadd.f32 %v192_v32, %v186_v33 }
 0x124   :  { %v199_v36 = vadd.f32 %v198_v34, %v193_v35 }
 0x126   :  { %200 = vst [vmem:[#allocation7] sm:$0xf] %v199_v36 }
 0x127   :  { %211 = dma.vmem_to_hbm [thread:$0]  %s207_s20, 64, %s209_s23, [#allocation4]  }
 0x128   :  { %341 = dma.done.wait [#allocation4], 64  }
 0x129   :  { %342 = vsyncadd [#allocation4], 4294967232 }
 0x12a   :  { %216 = vsyncpa [#allocation3], 1 }
 0x12b   :  { %217 = vsyncpa [#allocation6], 1 }
 0x12c   :  { %218 = vsyncpa [#allocation4], 1 }

</bundles_post_ra>
